<compile_context>
chip_gen: v7x
topology: tpu7x:2x2x1
jax: 0.10.0
libtpu: 0.0.40
codegen_flags: <defaults>
</compile_context>

<pallas_src>
import functools
import math

import jax
import jax.numpy as jnp
from jax import lax
from jax.experimental import pallas as pl
from jax.experimental.pallas import tpu as pltpu


# ---------------------------------------------------------------------------
# Fused MHA kernel: one grid step per batch element.
# ---------------------------------------------------------------------------

def _mha_fused_kernel(temp_ref, in_w_ref, in_b_ref, out_w_ref, out_b_ref,
                      o_ref, attn_scratch, *, nhead, scale, residual):
    # temp_ref: (1, S, D) tile for the current batch; weights are full arrays
    # resident in VMEM (constant index_map => fetched once for the whole grid).
    x = temp_ref[0]                       # (S, D)
    in_w = in_w_ref[...]                  # (3D, D)   PyTorch layout, no transpose
    in_b = in_b_ref[...]                  # (1, 3D)
    out_w = out_w_ref[...]                # (D, D)
    out_b = out_b_ref[...]                # (1, D)

    S, D = x.shape
    dh = D // nhead

    # Packed QKV projection: x @ in_w.T + in_b. dot_general contracts the D axis
    # of both operands directly, so the MXU consumes the (3D, D) weight without
    # a physical transpose.
    qkv = lax.dot_general(
        x, in_w, (((1,), (1,)), ((), ())),
        preferred_element_type=jnp.float32) + in_b          # (S, 3D), f32

    # Per-head attention; heads live on the lane axis (static lane offsets).
    # Head outputs are written into a lane-dense (S, D) VMEM slab so the final
    # output projection runs as a single K=D matmul.
    for h in range(nhead):
        # Fold 1/sqrt(dh) into the (S, dh) Q slice (cheaper than scaling (S, S)).
        q = qkv[:, h * dh:(h + 1) * dh] * scale              # (S, dh)
        k = qkv[:, D + h * dh: D + (h + 1) * dh]             # (S, dh)
        v = qkv[:, 2 * D + h * dh: 2 * D + (h + 1) * dh]     # (S, dh)

        # scores = (Q/sqrt(dh)) K^T; contract dh directly (no k.T / XLU push).
        s = lax.dot_general(
            q, k, (((1,), (1,)), ((), ())),
            preferred_element_type=jnp.float32)              # (S, S)

        m = jnp.max(s, axis=-1, keepdims=True)
        p = jnp.exp(s - m)                                   # EUP
        inv_l = pl.reciprocal(jnp.sum(p, axis=-1, keepdims=True), approx=True)
        # Fold 1/l into the (S, dh) output instead of rescaling the (S, S) probs.
        o_h = jnp.dot(p, v, preferred_element_type=jnp.float32) * inv_l
        attn_scratch[:, h * dh:(h + 1) * dh] = o_h

    attn = attn_scratch[...]                                 # (S, D), f32
    # Output projection: attn @ out_w.T + out_b (again no physical transpose).
    y = lax.dot_general(
        attn, out_w, (((1,), (1,)), ((), ())),
        preferred_element_type=jnp.float32) + out_b          # (S, D)

    if residual:
        y = y + x

    o_ref[0] = y.astype(o_ref.dtype)


def mha_forward(visual_features, encoded_prompt, params, nhead,
                residual_connection=True):
    """visual_features: (B, Sv, D), encoded_prompt: (B, Sp, D) -> (B, Sv+Sp, D)."""
    temp = jnp.concatenate([visual_features, encoded_prompt], axis=1)  # (B, S, D)
    B, S, D = temp.shape
    assert D % nhead == 0, "d_model must be divisible by nhead"
    dh = D // nhead
    scale = 1.0 / math.sqrt(dh)

    in_w = params["in_proj_weight"]                  # (3D, D) -- used as-is
    in_b = params["in_proj_bias"].reshape(1, 3 * D)
    out_w = params["out_proj_weight"]                # (D, D)  -- used as-is
    out_b = params["out_proj_bias"].reshape(1, D)

    kernel = functools.partial(_mha_fused_kernel, nhead=nhead, scale=scale,
                               residual=bool(residual_connection))

    # Advisory cost hint for XLA's scheduler around the fused custom call.
    flops = (2 * B * S * D * (3 * D)        # QKV projection
             + 4 * B * S * S * D            # QK^T and PV over all heads
             + 2 * B * S * D * D)           # output projection
    transcendentals = B * nhead * S * S     # exp in softmax
    bytes_accessed = 4 * (2 * B * S * D + 3 * D * D + 3 * D + D * D + D)
    cost = pl.CostEstimate(flops=flops, transcendentals=transcendentals,
                           bytes_accessed=bytes_accessed)

    return pl.pallas_call(
        kernel,
        out_shape=jax.ShapeDtypeStruct((B, S, D), temp.dtype),
        grid=(B,),
        in_specs=[
            pl.BlockSpec((1, S, D), lambda b: (b, 0, 0)),     # temp (per batch)
            pl.BlockSpec((3 * D, D), lambda b: (0, 0)),       # in_proj_weight
            pl.BlockSpec((1, 3 * D), lambda b: (0, 0)),       # in_proj_bias
            pl.BlockSpec((D, D), lambda b: (0, 0)),           # out_proj_weight
            pl.BlockSpec((1, D), lambda b: (0, 0)),           # out_proj_bias
        ],
        out_specs=pl.BlockSpec((1, S, D), lambda b: (b, 0, 0)),
        scratch_shapes=[pltpu.VMEM((S, D), jnp.float32)],     # merged-heads slab
        compiler_params=pltpu.CompilerParams(
            dimension_semantics=("parallel",)),
        cost_estimate=cost,
    )(temp, in_w, in_b, out_w, out_b)


# ---------------------------------------------------------------------------
# Pure-JAX reference for correctness check.
# ---------------------------------------------------------------------------

def _reference(visual_features, encoded_prompt, params, nhead):
    temp = jnp.concatenate([visual_features, encoded_prompt], axis=1)
    B, S, D = temp.shape
    dh = D // nhead
    qkv = temp @ params["in_proj_weight"].T + params["in_proj_bias"]
    q, k, v = jnp.split(qkv, 3, axis=-1)
    q = q.reshape(B, S, nhead, dh).transpose(0, 2, 1, 3)
    k = k.reshape(B, S, nhead, dh).transpose(0, 2, 1, 3)
    v = v.reshape(B, S, nhead, dh).transpose(0, 2, 1, 3)
    scores = jnp.einsum("bhqd,bhkd->bhqk", q, k) / math.sqrt(dh)
    p = jax.nn.softmax(scores, axis=-1)
    o = jnp.einsum("bhqk,bhkd->bhqd", p, v)
    o = o.transpose(0, 2, 1, 3).reshape(B, S, D)
    x = o @ params["out_proj_weight"].T + params["out_proj_bias"]
    return temp + x


if __name__ == "__main__":
    # Small deterministic setup.
    d_model, nhead = 32, 4
    B, S_vis, S_prompt = 2, 6, 10

    key = jax.random.PRNGKey(0)
    k1, k2, k3, k4, k5, k6 = jax.random.split(key, 6)

    params = {
        "in_proj_weight": 0.05 * jax.random.normal(k1, (3 * d_model, d_model), jnp.float32),
        "in_proj_bias":   0.05 * jax.random.normal(k2, (3 * d_model,), jnp.float32),
        "out_proj_weight": 0.05 * jax.random.normal(k3, (d_model, d_model), jnp.float32),
        "out_proj_bias":   0.05 * jax.random.normal(k4, (d_model,), jnp.float32),
    }

    visual_features = jax.random.normal(k5, (B, S_vis, d_model), jnp.float32)
    encoded_prompt = jax.random.normal(k6, (B, S_prompt, d_model), jnp.float32)

    out = mha_forward(visual_features, encoded_prompt, params, nhead,
                      residual_connection=True)
    out = jax.block_until_ready(out)

    ref = _reference(visual_features, encoded_prompt, params, nhead)
    assert out.shape == (B, S_vis + S_prompt, d_model)
    # Tolerance relaxed vs. 1e-4 because pl.reciprocal(approx=True) introduces
    # ~1e-3 relative error in the softmax denominator (documented trade-off).
    assert jnp.allclose(out, ref, atol=2e-3, rtol=2e-3), "mismatch vs reference"

    print("KERNEL_OK")
</pallas_src>

<mosaic_0001>
module attributes {stable_mosaic.version = 11 : i64} {
  func.func @_mha_fused_kernel(%arg0: i32, %arg1: memref<1x16x32xf32, #tpu.memory_space<vmem>>, %arg2: memref<96x32xf32, #tpu.memory_space<vmem>>, %arg3: memref<1x96xf32, #tpu.memory_space<vmem>>, %arg4: memref<32x32xf32, #tpu.memory_space<vmem>>, %arg5: memref<1x32xf32, #tpu.memory_space<vmem>>, %arg6: memref<1x16x32xf32, #tpu.memory_space<vmem>>, %arg7: memref<16x32xf32, #tpu.memory_space<vmem>>) attributes {dimension_semantics = [#tpu.dimension_semantics<parallel>], iteration_bounds = array<i64: 2>, scalar_prefetch = 0 : i64, scratch_operands = 1 : i64, tpu.core_type = #tpu.core_type<tc>, window_params = [{transform_indices = @transform_0, window_bounds = array<i64: 1, 16, 32>}, {pipeline_mode = #tpu.pipeline_mode<synchronous>, transform_indices = @transform_1, window_bounds = array<i64: 96, 32>}, {pipeline_mode = #tpu.pipeline_mode<synchronous>, transform_indices = @transform_2, window_bounds = array<i64: 1, 96>}, {pipeline_mode = #tpu.pipeline_mode<synchronous>, transform_indices = @transform_3, window_bounds = array<i64: 32, 32>}, {pipeline_mode = #tpu.pipeline_mode<synchronous>, transform_indices = @transform_4, window_bounds = array<i64: 1, 32>}, {transform_indices = @transform_5, window_bounds = array<i64: 1, 16, 32>}]} {
    %c0 = arith.constant 0 : index
    %c0_0 = arith.constant 0 : index
    %c0_1 = arith.constant 0 : index
    %0 = vector.load %arg1[%c0, %c0_0, %c0_1] : memref<1x16x32xf32, #tpu.memory_space<vmem>>, vector<1x16x32xf32>
    %1 = vector.shape_cast %0 : vector<1x16x32xf32> to vector<16x32xf32>
    %c0_2 = arith.constant 0 : index
    %c0_3 = arith.constant 0 : index
    %2 = vector.load %arg2[%c0_2, %c0_3] : memref<96x32xf32, #tpu.memory_space<vmem>>, vector<96x32xf32>
    %c0_4 = arith.constant 0 : index
    %c0_5 = arith.constant 0 : index
    %3 = vector.load %arg3[%c0_4, %c0_5] : memref<1x96xf32, #tpu.memory_space<vmem>>, vector<1x96xf32>
    %c0_6 = arith.constant 0 : index
    %c0_7 = arith.constant 0 : index
    %4 = vector.load %arg4[%c0_6, %c0_7] : memref<32x32xf32, #tpu.memory_space<vmem>>, vector<32x32xf32>
    %c0_8 = arith.constant 0 : index
    %c0_9 = arith.constant 0 : index
    %5 = vector.load %arg5[%c0_8, %c0_9] : memref<1x32xf32, #tpu.memory_space<vmem>>, vector<1x32xf32>
    %cst = arith.constant dense<0.000000e+00> : vector<16x96xf32>
    %6 = tpu.matmul %1, %2, %cst {dimension_numbers = #tpu.dot_dimension_numbers<[1], [1], [0], [0], [0, 0, 1, 0], [], []>} : vector<16x32xf32>, vector<96x32xf32>, vector<16x96xf32> -> vector<16x96xf32>
    %7 = vector.broadcast %3 : vector<1x96xf32> to vector<16x96xf32>
    %8 = arith.addf %6, %7 : vector<16x96xf32>
    %9 = vector.extract_strided_slice %8 {offsets = [0, 0], sizes = [16, 8], strides = [1, 1]} : vector<16x96xf32> to vector<16x8xf32>
    %cst_10 = arith.constant 0.353553385 : f32
    %10 = vector.broadcast %cst_10 : f32 to vector<16x8xf32>
    %11 = arith.mulf %9, %10 : vector<16x8xf32>
    %12 = vector.extract_strided_slice %8 {offsets = [0, 32], sizes = [16, 8], strides = [1, 1]} : vector<16x96xf32> to vector<16x8xf32>
    %13 = vector.extract_strided_slice %8 {offsets = [0, 64], sizes = [16, 8], strides = [1, 1]} : vector<16x96xf32> to vector<16x8xf32>
    %cst_11 = arith.constant dense<0.000000e+00> : vector<16x16xf32>
    %14 = tpu.matmul %11, %12, %cst_11 {dimension_numbers = #tpu.dot_dimension_numbers<[1], [1], [0], [0], [0, 0, 1, 0], [], []>} : vector<16x8xf32>, vector<16x8xf32>, vector<16x16xf32> -> vector<16x16xf32>
    %cst_12 = arith.constant dense<0xFF800000> : vector<16xf32>
    %15 = vector.multi_reduction <maximumf>, %14, %cst_12 [1] : vector<16x16xf32> to vector<16xf32>
    %16 = vector.shape_cast %15 : vector<16xf32> to vector<16x1xf32>
    %17 = vector.broadcast %16 : vector<16x1xf32> to vector<16x16xf32>
    %18 = arith.subf %14, %17 : vector<16x16xf32>
    %19 = math.exp %18 : vector<16x16xf32>
    %cst_13 = arith.constant dense<0.000000e+00> : vector<16xf32>
    %20 = vector.multi_reduction <add>, %19, %cst_13 [1] : vector<16x16xf32> to vector<16xf32>
    %21 = vector.shape_cast %20 : vector<16xf32> to vector<16x1xf32>
    %22 = tpu.reciprocal %21 {approx = true} : vector<16x1xf32> -> vector<16x1xf32>
    %cst_14 = arith.constant dense<0.000000e+00> : vector<16x8xf32>
    %23 = tpu.matmul %19, %13, %cst_14 {dimension_numbers = #tpu.dot_dimension_numbers<[1], [0], [0], [1], [0, 0, 1, 1], [], []>} : vector<16x16xf32>, vector<16x8xf32>, vector<16x8xf32> -> vector<16x8xf32>
    %24 = vector.broadcast %22 : vector<16x1xf32> to vector<16x8xf32>
    %25 = arith.mulf %23, %24 : vector<16x8xf32>
    %c0_15 = arith.constant 0 : index
    %c0_16 = arith.constant 0 : index
    %26 = vector.load %arg7[%c0_15, %c0_16] : memref<16x32xf32, #tpu.memory_space<vmem>>, vector<16x8xf32>
    tpu.vector_store %arg7[%c0_15, %c0_16], %25 {strides = array<i32>} : memref<16x32xf32, #tpu.memory_space<vmem>>, vector<16x8xf32>,
    %27 = vector.extract_strided_slice %8 {offsets = [0, 8], sizes = [16, 8], strides = [1, 1]} : vector<16x96xf32> to vector<16x8xf32>
    %cst_17 = arith.constant 0.353553385 : f32
    %28 = vector.broadcast %cst_17 : f32 to vector<16x8xf32>
    %29 = arith.mulf %27, %28 : vector<16x8xf32>
    %30 = vector.extract_strided_slice %8 {offsets = [0, 40], sizes = [16, 8], strides = [1, 1]} : vector<16x96xf32> to vector<16x8xf32>
    %31 = vector.extract_strided_slice %8 {offsets = [0, 72], sizes = [16, 8], strides = [1, 1]} : vector<16x96xf32> to vector<16x8xf32>
    %cst_18 = arith.constant dense<0.000000e+00> : vector<16x16xf32>
    %32 = tpu.matmul %29, %30, %cst_18 {dimension_numbers = #tpu.dot_dimension_numbers<[1], [1], [0], [0], [0, 0, 1, 0], [], []>} : vector<16x8xf32>, vector<16x8xf32>, vector<16x16xf32> -> vector<16x16xf32>
    %cst_19 = arith.constant dense<0xFF800000> : vector<16xf32>
    %33 = vector.multi_reduction <maximumf>, %32, %cst_19 [1] : vector<16x16xf32> to vector<16xf32>
    %34 = vector.shape_cast %33 : vector<16xf32> to vector<16x1xf32>
    %35 = vector.broadcast %34 : vector<16x1xf32> to vector<16x16xf32>
    %36 = arith.subf %32, %35 : vector<16x16xf32>
    %37 = math.exp %36 : vector<16x16xf32>
    %cst_20 = arith.constant dense<0.000000e+00> : vector<16xf32>
    %38 = vector.multi_reduction <add>, %37, %cst_20 [1] : vector<16x16xf32> to vector<16xf32>
    %39 = vector.shape_cast %38 : vector<16xf32> to vector<16x1xf32>
    %40 = tpu.reciprocal %39 {approx = true} : vector<16x1xf32> -> vector<16x1xf32>
    %cst_21 = arith.constant dense<0.000000e+00> : vector<16x8xf32>
    %41 = tpu.matmul %37, %31, %cst_21 {dimension_numbers = #tpu.dot_dimension_numbers<[1], [0], [0], [1], [0, 0, 1, 1], [], []>} : vector<16x16xf32>, vector<16x8xf32>, vector<16x8xf32> -> vector<16x8xf32>
    %42 = vector.broadcast %40 : vector<16x1xf32> to vector<16x8xf32>
    %43 = arith.mulf %41, %42 : vector<16x8xf32>
    %c0_22 = arith.constant 0 : index
    %c8 = arith.constant 8 : index
    %44 = vector.load %arg7[%c0_22, %c8] : memref<16x32xf32, #tpu.memory_space<vmem>>, vector<16x8xf32>
    tpu.vector_store %arg7[%c0_22, %c8], %43 {strides = array<i32>} : memref<16x32xf32, #tpu.memory_space<vmem>>, vector<16x8xf32>,
    %45 = vector.extract_strided_slice %8 {offsets = [0, 16], sizes = [16, 8], strides = [1, 1]} : vector<16x96xf32> to vector<16x8xf32>
    %cst_23 = arith.constant 0.353553385 : f32
    %46 = vector.broadcast %cst_23 : f32 to vector<16x8xf32>
    %47 = arith.mulf %45, %46 : vector<16x8xf32>
    %48 = vector.extract_strided_slice %8 {offsets = [0, 48], sizes = [16, 8], strides = [1, 1]} : vector<16x96xf32> to vector<16x8xf32>
    %49 = vector.extract_strided_slice %8 {offsets = [0, 80], sizes = [16, 8], strides = [1, 1]} : vector<16x96xf32> to vector<16x8xf32>
    %cst_24 = arith.constant dense<0.000000e+00> : vector<16x16xf32>
    %50 = tpu.matmul %47, %48, %cst_24 {dimension_numbers = #tpu.dot_dimension_numbers<[1], [1], [0], [0], [0, 0, 1, 0], [], []>} : vector<16x8xf32>, vector<16x8xf32>, vector<16x16xf32> -> vector<16x16xf32>
    %cst_25 = arith.constant dense<0xFF800000> : vector<16xf32>
    %51 = vector.multi_reduction <maximumf>, %50, %cst_25 [1] : vector<16x16xf32> to vector<16xf32>
    %52 = vector.shape_cast %51 : vector<16xf32> to vector<16x1xf32>
    %53 = vector.broadcast %52 : vector<16x1xf32> to vector<16x16xf32>
    %54 = arith.subf %50, %53 : vector<16x16xf32>
    %55 = math.exp %54 : vector<16x16xf32>
    %cst_26 = arith.constant dense<0.000000e+00> : vector<16xf32>
    %56 = vector.multi_reduction <add>, %55, %cst_26 [1] : vector<16x16xf32> to vector<16xf32>
    %57 = vector.shape_cast %56 : vector<16xf32> to vector<16x1xf32>
    %58 = tpu.reciprocal %57 {approx = true} : vector<16x1xf32> -> vector<16x1xf32>
    %cst_27 = arith.constant dense<0.000000e+00> : vector<16x8xf32>
    %59 = tpu.matmul %55, %49, %cst_27 {dimension_numbers = #tpu.dot_dimension_numbers<[1], [0], [0], [1], [0, 0, 1, 1], [], []>} : vector<16x16xf32>, vector<16x8xf32>, vector<16x8xf32> -> vector<16x8xf32>
    %60 = vector.broadcast %58 : vector<16x1xf32> to vector<16x8xf32>
    %61 = arith.mulf %59, %60 : vector<16x8xf32>
    %c0_28 = arith.constant 0 : index
    %c16 = arith.constant 16 : index
    %62 = vector.load %arg7[%c0_28, %c16] : memref<16x32xf32, #tpu.memory_space<vmem>>, vector<16x8xf32>
    tpu.vector_store %arg7[%c0_28, %c16], %61 {strides = array<i32>} : memref<16x32xf32, #tpu.memory_space<vmem>>, vector<16x8xf32>,
    %63 = vector.extract_strided_slice %8 {offsets = [0, 24], sizes = [16, 8], strides = [1, 1]} : vector<16x96xf32> to vector<16x8xf32>
    %cst_29 = arith.constant 0.353553385 : f32
    %64 = vector.broadcast %cst_29 : f32 to vector<16x8xf32>
    %65 = arith.mulf %63, %64 : vector<16x8xf32>
    %66 = vector.extract_strided_slice %8 {offsets = [0, 56], sizes = [16, 8], strides = [1, 1]} : vector<16x96xf32> to vector<16x8xf32>
    %67 = vector.extract_strided_slice %8 {offsets = [0, 88], sizes = [16, 8], strides = [1, 1]} : vector<16x96xf32> to vector<16x8xf32>
    %cst_30 = arith.constant dense<0.000000e+00> : vector<16x16xf32>
    %68 = tpu.matmul %65, %66, %cst_30 {dimension_numbers = #tpu.dot_dimension_numbers<[1], [1], [0], [0], [0, 0, 1, 0], [], []>} : vector<16x8xf32>, vector<16x8xf32>, vector<16x16xf32> -> vector<16x16xf32>
    %cst_31 = arith.constant dense<0xFF800000> : vector<16xf32>
    %69 = vector.multi_reduction <maximumf>, %68, %cst_31 [1] : vector<16x16xf32> to vector<16xf32>
    %70 = vector.shape_cast %69 : vector<16xf32> to vector<16x1xf32>
    %71 = vector.broadcast %70 : vector<16x1xf32> to vector<16x16xf32>
    %72 = arith.subf %68, %71 : vector<16x16xf32>
    %73 = math.exp %72 : vector<16x16xf32>
    %cst_32 = arith.constant dense<0.000000e+00> : vector<16xf32>
    %74 = vector.multi_reduction <add>, %73, %cst_32 [1] : vector<16x16xf32> to vector<16xf32>
    %75 = vector.shape_cast %74 : vector<16xf32> to vector<16x1xf32>
    %76 = tpu.reciprocal %75 {approx = true} : vector<16x1xf32> -> vector<16x1xf32>
    %cst_33 = arith.constant dense<0.000000e+00> : vector<16x8xf32>
    %77 = tpu.matmul %73, %67, %cst_33 {dimension_numbers = #tpu.dot_dimension_numbers<[1], [0], [0], [1], [0, 0, 1, 1], [], []>} : vector<16x16xf32>, vector<16x8xf32>, vector<16x8xf32> -> vector<16x8xf32>
    %78 = vector.broadcast %76 : vector<16x1xf32> to vector<16x8xf32>
    %79 = arith.mulf %77, %78 : vector<16x8xf32>
    %c0_34 = arith.constant 0 : index
    %c24 = arith.constant 24 : index
    %80 = vector.load %arg7[%c0_34, %c24] : memref<16x32xf32, #tpu.memory_space<vmem>>, vector<16x8xf32>
    tpu.vector_store %arg7[%c0_34, %c24], %79 {strides = array<i32>} : memref<16x32xf32, #tpu.memory_space<vmem>>, vector<16x8xf32>,
    %c0_35 = arith.constant 0 : index
    %c0_36 = arith.constant 0 : index
    %81 = vector.load %arg7[%c0_35, %c0_36] : memref<16x32xf32, #tpu.memory_space<vmem>>, vector<16x32xf32>
    %cst_37 = arith.constant dense<0.000000e+00> : vector<16x32xf32>
    %82 = tpu.matmul %81, %4, %cst_37 {dimension_numbers = #tpu.dot_dimension_numbers<[1], [1], [0], [0], [0, 0, 1, 0], [], []>} : vector<16x32xf32>, vector<32x32xf32>, vector<16x32xf32> -> vector<16x32xf32>
    %83 = vector.broadcast %5 : vector<1x32xf32> to vector<16x32xf32>
    %84 = arith.addf %82, %83 : vector<16x32xf32>
    %85 = arith.addf %84, %1 : vector<16x32xf32>
    %c0_38 = arith.constant 0 : index
    %c0_39 = arith.constant 0 : index
    %c0_40 = arith.constant 0 : index
    %86 = vector.load %arg6[%c0_38, %c0_39, %c0_40] : memref<1x16x32xf32, #tpu.memory_space<vmem>>, vector<1x16x32xf32>
    %87 = vector.shape_cast %86 : vector<1x16x32xf32> to vector<16x32xf32>
    %88 = vector.shape_cast %85 : vector<16x32xf32> to vector<1x16x32xf32>
    tpu.vector_store %arg6[%c0_38, %c0_39, %c0_40], %88 {strides = array<i32>} : memref<1x16x32xf32, #tpu.memory_space<vmem>>, vector<1x16x32xf32>,
    return
  }
  func.func @transform_0(%arg0: i32) -> (i32, i32, i32) {
    %c0_i32 = arith.constant 0 : i32
    %c0_i32_0 = arith.constant 0 : i32
    %c0_i32_1 = arith.constant 0 : i32
    return %arg0, %c0_i32, %c0_i32_0 : i32, i32, i32
  }
  func.func @transform_1(%arg0: i32) -> (i32, i32) {
    %c0_i32 = arith.constant 0 : i32
    %c0_i32_0 = arith.constant 0 : i32
    %c0_i32_1 = arith.constant 0 : i32
    return %c0_i32, %c0_i32_0 : i32, i32
  }
  func.func @transform_2(%arg0: i32) -> (i32, i32) {
    %c0_i32 = arith.constant 0 : i32
    %c0_i32_0 = arith.constant 0 : i32
    %c0_i32_1 = arith.constant 0 : i32
    return %c0_i32, %c0_i32_0 : i32, i32
  }
  func.func @transform_3(%arg0: i32) -> (i32, i32) {
    %c0_i32 = arith.constant 0 : i32
    %c0_i32_0 = arith.constant 0 : i32
    %c0_i32_1 = arith.constant 0 : i32
    return %c0_i32, %c0_i32_0 : i32, i32
  }
  func.func @transform_4(%arg0: i32) -> (i32, i32) {
    %c0_i32 = arith.constant 0 : i32
    %c0_i32_0 = arith.constant 0 : i32
    %c0_i32_1 = arith.constant 0 : i32
    return %c0_i32, %c0_i32_0 : i32, i32
  }
  func.func @transform_5(%arg0: i32) -> (i32, i32, i32) {
    %c0_i32 = arith.constant 0 : i32
    %c0_i32_0 = arith.constant 0 : i32
    %c0_i32_1 = arith.constant 0 : i32
    return %arg0, %c0_i32, %c0_i32_0 : i32, i32, i32
  }
}

</mosaic_0001>

<bundles_post_ra>
// kernel: tpu_custom_call.1
= control target key start
LH: loop header
LB: loop body
LE: loop exit
PB: predicated region body
PF: predicated region fallthrough
CT: control target
= control target key end

     0   :  { %10 = vsyncpa [#allocation4], 0  ;;  %s2230_s0 = inlined_call_operand.vmem [shape: f32[2,16,32], index: 0, kind: input, shape index: {}]   ;;  %s2231_s1 = inlined_call_operand.vmem [shape: f32[96,32], index: 1, kind: input, shape index: {}]   ;;  %s2232_s2 = inlined_call_operand.vmem [shape: f32[1,96], index: 2, kind: input, shape index: {}]   ;;  %s2233_s3 = inlined_call_operand.vmem [shape: f32[32,32], index: 3, kind: input, shape index: {}]   ;;  %s2234_s4 = inlined_call_operand.vmem [shape: f32[1,32], index: 4, kind: input, shape index: {}]   ;;  %s2235_s5 = inlined_call_operand.hbm [shape: f32[2,16,32], index: 5, kind: output, shape index: {}]  }
   0x1   :  { %12 = vsyncpa [#allocation4 + $0x1], 0  ;;  %s1917_s18 = smov 0   ;;  %s1919_s19 = smov 0  }
   0x2   :  { %s1921_s20 = smov 0   ;;  %s1923_s21 = smov 0  }
   0x3 LB: > { %s1938_s22 = sadd.s32 4294967295, %s1869_s21   ;;  %s1387_s23 = sadd.s32 4294967294, %s1869_s21   ;;  %s1869_s21 = sphi %s1923_s21, %s2245_s21   ;;  %s1865_s20 = sphi %s1921_s20, %s2244_s20   ;;  %s1861_s19 = sphi %s1919_s19, %s2243_s19   ;;  %s1857_s18 = sphi %s1917_s18, %s2242_s18  }
   0x4   : > { %s1942_s24 = sadd.s32 1, %s1869_s21   ;;  %s135_s25 = sadd.s32 1, %s1865_s20 }
   0x5   : > { %s132_s26 = ssub.s32 %s1869_s21, %s1942_s24  ;;  %p145_p0 = scmp.ne.s32.totalorder %s1865_s20, %s1861_s19 }
   0x6   : > { %p133_p1 = scmp.eq.s32.totalorder %s132_s26, 0  ;;  %p146_p2 = scmp.eq.s32.totalorder %s1938_s22, 1 }
   0x7   : > { %p151_p3 = scmp.ne.s32.totalorder %s1861_s19, %s1857_s18  ;;  %p152_p4 = scmp.eq.s32.totalorder %s1387_s23, 1 }
   0x8   : > { %s1953_s27 = scalar_select %p133_p1, %s1865_s20, %s135_s25  }
   0x9   : > { %p1955_p5 = por %p146_p2, %p145_p0  ;;  %p1959_p6 = por %p152_p4, %p151_p3 }
   0xa   : > { %p1390_p7 = scmp.ge.s32.totalorder %s1869_s21, 1  ;;  %p190_p8 = scmp.lt.s32.totalorder %s1869_s21, 3 }
   0xc   : > { %p191_p9 = pnand %p1390_p7, %p190_p8 }
   0xd   : > { %v225_v0 = vld [vmem:[%s2231_s1] sm:$0xff] (!%p191_p9)  ;;  %v226_v1 = vld [vmem:[%s2231_s1 + $0x8] sm:$0xff] (!%p191_p9)  ;;  %vm249_vm0 = vcmask (!%p191_p9), 261120   ;;  %v227_v2 = vld [vmem:[%s2231_s1 + $0x10] sm:$0xff] (!%p191_p9)  ;;  %p218_p10 = scmp.lt.s32.totalorder (!%p191_p9), %s1938_s22, 1  ;;  %vm375_vm2 = vcmask (!%p191_p9), 64512  }
   0xe   : > { %194 = sbr.rel (%p191_p9) target bundleno = 2491 (0x9bb), region = 40  ;;  %v1593_v3 = vpack.c.bf16 (!%p191_p9), %v226_v1, %v225_v0  ;;  %vm1977_vm1 = vmpackc.low (!%p191_p9), %vm249_vm0, %vm249_vm0  ;;  %v228_v5 = vld [vmem:[%s2231_s1 + $0x18] sm:$0xff] (!%p191_p9)  ;;  %v229_v7 = vld [vmem:[%s2231_s1 + $0x20] sm:$0xff] (!%p191_p9)  ;;  %s1871_s30 = smov (!%p191_p9), 96   ;;  %vm461_vm4 = vcmask (!%p191_p9), 130048   ;;  %vm781_vm5 = vcmask (!%p191_p9), 130112  }
   0xf   : > { %v1599_v6 = vpack.c.bf16 (!%p191_p9), %v228_v5, %v227_v2  ;;  %v230_v8 = vld [vmem:[%s2231_s1 + $0x28] sm:$0xff] (!%p191_p9)  ;;  %v231_v11 = vld [vmem:[%s2231_s1 + $0x30] sm:$0xff] (!%p191_p9)  ;;  %v232_v12 = vld [vmem:[%s2231_s1 + $0x38] sm:$0xff] (!%p191_p9)  ;;  %s1873_s6 = smov (!%p191_p9), 88   ;;  %s1874_s7 = smov (!%p191_p9), 120   ;;  %vm992_vm6 = vcmask (!%p191_p9), 195712  }
  0x10   : > { %1595 = vmatprep.subr.msk.bf16.mxu0 (!%p191_p9), %vm1977_vm1, %v1593_v3  ;;  %v1605_v10 = vpack.c.bf16 (!%p191_p9), %v230_v8, %v229_v7  ;;  %v1611_v13 = vpack.c.bf16 (!%p191_p9), %v232_v12, %v231_v11  ;;  %v233_v14 = vld [vmem:[%s2231_s1 + $0x40] sm:$0xff] (!%p191_p9)  ;;  %v234_v15 = vld [vmem:[%s2231_s1 + $0x48] sm:$0xff] (!%p191_p9)  ;;  %v235_v17 = vld [vmem:[%s2231_s1 + $0x50] sm:$0xff] (!%p191_p9)  ;;  %s1875_s8 = smov (!%p191_p9), 48   ;;  %s1876_s9 = smov (!%p191_p9), 56   ;;  %vm1203_vm7 = vcmask (!%p191_p9), 261312  }
  0x11   : > { %1598 = vmatpush3.bf16.xpose.msk.msra.mxu0 (!%p191_p9), %vm1977_vm1, %v1593_v3  ;;  %v1617_v16 = vpack.c.bf16 (!%p191_p9), %v234_v15, %v233_v14  ;;  %v236_v18 = vld [vmem:[%s2231_s1 + $0x58] sm:$0xff] (!%p191_p9)  ;;  %v1394_v21 = vld [vmem:[%s2232_s2] ss:$0 sm:$0xff] (!%p191_p9)  ;;  %vm2056_vm3 = vmpackc.low (!%p191_p9), %vm375_vm2, %vm375_vm2  ;;  %s1877_s10 = smov (!%p191_p9), 72   ;;  %s1878_s11 = smov (!%p191_p9), 80  }
  0x12   : > { %1601 = vmatprep.subr.msk.bf16.mxu0 (!%p191_p9), %vm1977_vm1, %v1599_v6  ;;  %v1623_v19 = vpack.c.bf16 (!%p191_p9), %v236_v18, %v235_v17  ;;  %s1879_s12 = smov (!%p191_p9), 112   ;;  %s1882_s15 = smov (!%p191_p9), 8  }
  0x13   : > { %s1883_s16 = smov (!%p191_p9), 16   ;;  %s1446_s23 = sshll.u32 (!%p191_p9), %s1938_s22, 8 }
  0x15   : > { %s219_s13 = scalar_select %p218_p10, %s1938_s22, 1 }
  0x17   : > { %s1445_s14 = sshll.u32 %s219_s13, 4  ;;  %s1880_s13 = smov 104  }
  0x18   : > { %s222_s17 = scalar_lea.vmem %s2230_s0, %s1445_s14  ;;  %s1881_s14 = smov 40  }
  0x19   : > { %v2000_v9 = vld [vmem:[%s222_s17] sm:$0xff]  ;;  %1604 = vmatpush3.bf16.xpose.msk.msra.mxu0 %vm1977_vm1, %v1599_v6  ;;  %v2040_v20 = vld [vmem:[%s222_s17 + $0x8] sm:$0xff]  ;;  %s1872_s17 = smov 64  }
  0x1a   : > { %1523 = vmatprep.mubr.msk.f32.mxu0 %vm249_vm0, %v2000_v9  ;;  %1607 = vmatprep.subr.msk.bf16.mxu0 %vm1977_vm1, %v1605_v10 }
  0x21   : > { %1610 = vmatpush3.bf16.xpose.msk.msra.mxu0 %vm1977_vm1, %v1605_v10 }
  0x22   : > { %1613 = vmatprep.subr.msk.bf16.mxu0 %vm1977_vm1, %v1611_v13 }
  0x29   : > { %1616 = vmatpush3.bf16.xpose.msk.msra.mxu0 %vm1977_vm1, %v1611_v13 }
  0x2a   : > { %1619 = vmatprep.subr.msk.bf16.mxu0 %vm1977_vm1, %v1617_v16 }
  0x31   : > { %1622 = vmatpush3.bf16.xpose.msk.msra.mxu0 %vm1977_vm1, %v1617_v16 }
  0x32   : > { %1625 = vmatprep.subr.msk.bf16.mxu0 %vm1977_vm1, %v1623_v19 }
  0x39   : > { %1628 = vmatpush3.bf16.xpose.msk.msra.mxu0 %vm1977_vm1, %v1623_v19 }
  0x40   : > { %1524 = vmatmul.mubr.msk.f32.vlgmr.msra.gmra.mrb[0].mxu0 %vm249_vm0, %v2040_v20 }
 0x113   : > { %v1525_v22 = vpop.f32.mrb[0].mxu0 }
 0x114   : > { %v364_v23 = vadd.f32 %v1525_v22, %v1394_v21  ;;  %v358_v24 = vpop.f32.mrb[1].mxu0 }
 0x115   : > { %v359_v25 = vadd.f32 %v1394_v21, %v358_v24 }
 0x116   : > { %v2064_v33 = vmul.f32 0.35355338, %v364_v23 }
 0x117   : > { %v2047_v26 = vpack.i.bf16 %v364_v23, %v359_v25  ;;  %v2049_v27 = vmul.f32 0.35355338, %v359_v25 }
 0x119   : > { %1736 = vrot.lane.b32.xlu0 %v2047_v26, %s1871_s30  ;;  %1530 = vmatprep.mubr.msk.f32.mxu1 %vm375_vm2, %v2049_v27  ;;  %s2184_s30 = scalar_lea.hbm %s2235_s5, %s1446_s23 }
 0x18b   : > { %v1737_v28 = vpop.permute.xlu0 %1736 }
 0x18c   : > { %v1739_v29 = vunpack.i.h.bf16 %v1737_v28  ;;  %v1738_v30 = vunpack.i.l.bf16 %v1737_v28 }
 0x18e   : > { %v1629_v32 = vpack.c.bf16 %v1739_v29, %v1738_v30 }
 0x190   : > { %1631 = vmatprep.subr.msk.bf16.mxu1 %vm2056_vm3, %v1629_v32 }
 0x191   : > { %1634 = vmatpush3.bf16.xpose.msk.msra.mxu1 %vm2056_vm3, %v1629_v32 }
 0x198   : > { %1531 = vmatmul.mubr.msk.f32.vlgmr.msra.gmra.mrb[0].mxu1 %vm375_vm2, %v2064_v33 }
 0x26b   : > { %v1532_v34 = vpop.f32.mrb[0].mxu1 }
 0x26c   : > { %v452_v35 = vpop.f32.mrb[1].mxu1  ;;  %v465_v36 = vsel %vm461_vm4, %v1532_v34, -inf }
 0x26d   : > { %466 = vmax.xlane.f32.xlu1 %v465_v36  ;;  %v462_v37 = vsel %vm461_vm4, %v452_v35, -inf }
 0x26e   : > { %463 = vmax.xlane.f32.xlu0 %v462_v37 }
 0x27e   : > { %1741 = vrot.lane.b32.xlu1 %v2047_v26, %s1872_s17 }
 0x282   : > { %1746 = vrot.lane.b32.xlu1 %v2047_v26, %s1873_s6  ;;  %s1885_s6 = smov [#allocation3]  }
 0x286   : > { %573 = vrot.lane.b32.xlu1 %v2049_v27, %s1874_s7 }
 0x28a   : > { %575 = vrot.lane.b32.xlu1 %v2064_v33, %s1874_s7  ;;  %s1811_s7 = sshll.u32 %s1885_s6, 4  ;;  %s1812_s7 = int_to_ptr.vmem [resolvable:$false] %s1811_s7 }
 0x2fa   : > { %v467_v38 = vpop.xlane.xlu1 %466 }
 0x2fb   : > { %v469_v39 = vsub.f32 %v1532_v34, %v467_v38  ;;  %v464_v40 = vpop.xlane.xlu0 %463 }
 0x2fc   : > { %v468_v41 = vsub.f32 %v452_v35, %v464_v40 }
 0x2fd   : > { %v472_v42 = vmul.f32 1.442695, %v469_v39 }
 0x2fe   : > { %v470_v43 = vmul.f32 1.442695, %v468_v41  ;;  %v1742_v44 = vpop.permute.xlu1 %1741 }
 0x2ff   : > { %v1744_v45 = vunpack.i.h.bf16 %v1742_v44  ;;  %v1743_v46 = vunpack.i.l.bf16 %v1742_v44 }
 0x300   : > { %1775 = vpow2.f32 %v470_v43 }
 0x301   : > { %1777 = vpow2.f32 %v472_v42  ;;  %v1635_v47 = vpack.c.bf16 %v1744_v45, %v1743_v46 }
 0x302   : > { %v1747_v48 = vpop.permute.xlu1 %1746 }
 0x303   : > { %v1749_v49 = vunpack.i.h.bf16 %v1747_v48  ;;  %v1748_v50 = vunpack.i.l.bf16 %v1747_v48  ;;  %1636 = vmatprep.subr.bf16.mxu1 %v1635_v47 }
 0x304   : > { %1638 = vmatpush3.bf16.msra.mxu1 %v1635_v47 }
 0x305   : > { %v1639_v51 = vpack.c.bf16 %v1749_v49, %v1748_v50 }
 0x306   : > { %v574_v54 = vpop.permute.xlu1 %573 }
 0x307   : > { %1641 = vmatprep.subr.msk.bf16.mxu1 %vm2056_vm3, %v1639_v51 }
 0x30a   : > { %v2076_v52 = vpop.eup %1775  ;;  %v576_v55 = vpop.permute.xlu1 %575 }
 0x30b   : > { %v2078_v53 = vpop.eup %1777  ;;  %1537 = vmatprep.mubr.msk.f32.mxu1 %vm461_vm4, %v2076_v52 }
 0x30c   : > { %1538 = vmatmul.mubr.msk.f32.vlgmr.msra.gmra.mrb[2].mxu1 %vm461_vm4, %v2078_v53 }
 0x30d   : > { %1644 = vmatpush3.bf16.xpose.msk.msra.mxu1 %vm2056_vm3, %v1639_v51  ;;  %1544 = vmatprep.mubr.msk.f32.mxu1 %vm375_vm2, %v574_v54 }
 0x314   : > { %1545 = vmatmul.mubr.msk.f32.vlgmr.msra.gmra.mrb[4].mxu1 %vm375_vm2, %v576_v55 }
 0x3df   : > { %v2088_v56 = vpop.f32.mrb[2].mxu1 }
 0x3e0   : > { %v2090_v57 = vpop.f32.mrb[3].mxu1 }
 0x3e7   : > { %v1546_v58 = vpop.f32.mrb[4].mxu1 }
 0x3e8   : > { %v655_v59 = vpop.f32.mrb[5].mxu1  ;;  %v667_v60 = vsel %vm461_vm4, %v1546_v58, -inf }
 0x3e9   : > { %668 = vmax.xlane.f32.xlu0 %v667_v60  ;;  %v664_v61 = vsel %vm461_vm4, %v655_v59, -inf }
 0x3ea   : > { %665 = vmax.xlane.f32.xlu1 %v664_v61 }
 0x3fb   : > { %1761 = vrot.lane.b32.xlu1 %v2047_v26, %s1875_s8  ;;  %s1813_s8 = scalar_lea.vmem %s1812_s7, 512 }
 0x3ff   : > { %1751 = vrot.lane.b32.xlu0 %v2047_v26, %s1876_s9  ;;  %1766 = vrot.lane.b32.xlu1 %v2047_v26, %s1877_s10  ;;  %s1884_s9 = smov 24   ;;  %s215_s10 = sand.u32 1, %s1861_s19  }
 0x400   : > { %s2188_s22 = scalar_lea.sflag [#allocation4], %s215_s10 }
 0x403   : > { %1756 = vrot.lane.b32.xlu0 %v2047_v26, %s1878_s11  ;;  %s1391_s11 = sshll.u32 %s215_s10, 4 }
 0x407   : > { %784 = vrot.lane.b32.xlu0 %v2049_v27, %s1879_s12 }
 0x40b   : > { %786 = vrot.lane.b32.xlu0 %v2064_v33, %s1879_s12 }
 0x476   : > { %v669_v62 = vpop.xlane.xlu0 %668 }
 0x477   : > { %v671_v63 = vsub.f32 %v1546_v58, %v669_v62  ;;  %v666_v0 = vpop.xlane.xlu1 %665  ;;  %v477_v58 = vsel %vm461_vm4, %v2078_v53, 0.0 }
 0x478   : > { %v670_v1 = vsub.f32 %v655_v59, %v666_v0 }
 0x479   : > { %v674_v2 = vmul.f32 1.442695, %v671_v63 }
 0x47a   : > { %v672_v3 = vmul.f32 1.442695, %v670_v1  ;;  %v1752_v5 = vpop.permute.xlu0 %1751 }
 0x47b   : > { %v1754_v6 = vunpack.i.h.bf16 %v1752_v5  ;;  %v1753_v7 = vunpack.i.l.bf16 %v1752_v5  ;;  %v1762_v13 = vpop.permute.xlu1 %1761 }
 0x47c   : > { %1779 = vpow2.f32 %v672_v3  ;;  %v1764_v15 = vunpack.i.h.bf16 %v1762_v13  ;;  %v1763_v16 = vunpack.i.l.bf16 %v1762_v13 }
 0x47d   : > { %1781 = vpow2.f32 %v674_v2  ;;  %v1645_v8 = vpack.c.bf16 %v1754_v6, %v1753_v7 }
 0x47e   : > { %v1757_v10 = vpop.permute.xlu0 %1756  ;;  %v1655_v19 = vpack.c.bf16 %v1764_v15, %v1763_v16 }
 0x47f   : > { %v1759_v11 = vunpack.i.h.bf16 %v1757_v10  ;;  %v1758_v12 = vunpack.i.l.bf16 %v1757_v10  ;;  %1646 = vmatprep.subr.bf16.mxu1 %v1645_v8  ;;  %v1767_v22 = vpop.permute.xlu1 %1766 }
 0x480   : > { %1648 = vmatpush3.bf16.msra.mxu1 %v1645_v8  ;;  %v1769_v23 = vunpack.i.h.bf16 %v1767_v22  ;;  %v1768_v24 = vunpack.i.l.bf16 %v1767_v22 }
 0x481   : > { %v1649_v14 = vpack.c.bf16 %v1759_v11, %v1758_v12  ;;  %v474_v12 = vsel %vm461_vm4, %v2076_v52, 0.0 }
 0x482   : > { %v785_v21 = vpop.permute.xlu0 %784  ;;  %v1659_v28 = vpack.c.bf16 %v1769_v23, %v1768_v24 }
 0x483   : > { %1651 = vmatprep.subr.msk.bf16.mxu1 %vm2056_vm3, %v1649_v14 }
 0x486   : > { %v1780_v17 = vpop.eup %1779  ;;  %v787_v25 = vpop.permute.xlu0 %786 }
 0x487   : > { %v1782_v18 = vpop.eup %1781  ;;  %1551 = vmatprep.mubr.msk.f32.mxu1 %vm461_vm4, %v1780_v17  ;;  %v676_v55 = vsel %vm461_vm4, %v1780_v17, 0.0 }
 0x488   : > { %1552 = vmatmul.mubr.msk.f32.vlgmr.msra.gmra.mrb[6].mxu1 %vm461_vm4, %v1782_v18  ;;  %v679_v51 = vsel %vm461_vm4, %v1782_v18, 0.0 }
 0x489   : > { %1654 = vmatpush3.bf16.xpose.msk.msra.mxu1 %vm2056_vm3, %v1649_v14  ;;  %1558 = vmatprep.mubr.msk.f32.mxu1 %vm375_vm2, %v785_v21 }
 0x48a   : > { %1656 = vmatprep.subr.bf16.mxu1 %v1655_v19 }
 0x490   : > { %1559 = vmatmul.mubr.msk.f32.vlgmr.msra.gmra.mrb[8].mxu1 %vm375_vm2, %v787_v25  ;;  %v238_v25 = vld [vmem:[%s2233_s3] sm:$0xff] }
 0x491   : > { %1658 = vmatpush3.bf16.msra.mxu1 %v1655_v19 }
 0x492   : > { %1661 = vmatprep.subr.msk.bf16.mxu1 %vm2056_vm3, %v1659_v28 }
 0x55b   : > { %v2110_v29 = vpop.f32.mrb[6].mxu1 }
 0x55c   : > { %v2112_v30 = vpop.f32.mrb[7].mxu1 }
 0x563   : > { %v1560_v32 = vpop.f32.mrb[8].mxu1 }
 0x564   : > { %v866_v34 = vpop.f32.mrb[9].mxu1  ;;  %v878_v35 = vsel %vm461_vm4, %v1560_v32, -inf }
 0x565   : > { %879 = vmax.xlane.f32.xlu0 %v878_v35  ;;  %v875_v36 = vsel %vm461_vm4, %v866_v34, -inf }
 0x566   : > { %876 = vmax.xlane.f32.xlu1 %v875_v36 }
 0x577   : > { %995 = vrot.lane.b32.xlu1 %v2049_v27, %s1880_s13 }
 0x57b   : > { %997 = vrot.lane.b32.xlu1 %v2064_v33, %s1880_s13 }
 0x5f2   : > { %v880_v37 = vpop.xlane.xlu0 %879 }
 0x5f3   : > { %v882_v38 = vsub.f32 %v1560_v32, %v880_v37  ;;  %v877_v39 = vpop.xlane.xlu1 %876 }
 0x5f4   : > { %v881_v40 = vsub.f32 %v866_v34, %v877_v39 }
 0x5f5   : > { %v885_v41 = vmul.f32 1.442695, %v882_v38 }
 0x5f6   : > { %v883_v42 = vmul.f32 1.442695, %v881_v40  ;;  %v240_v40 = vld [vmem:[%s2233_s3 + $0x10] sm:$0xff] }
 0x5f7   : > { %v996_v45 = vpop.permute.xlu1 %995 }
 0x5f8   : > { %1783 = vpow2.f32 %v883_v42 }
 0x5f9   : > { %1785 = vpow2.f32 %v885_v41  ;;  %v241_v41 = vld [vmem:[%s2233_s3 + $0x18] sm:$0xff] }
 0x5fb   : > { %v998_v27 = vpop.permute.xlu1 %997 }
 0x602   : > { %v1784_v43 = vpop.eup %1783 }
 0x603   : > { %v1786_v44 = vpop.eup %1785  ;;  %1565 = vmatprep.mubr.msk.f32.mxu1 %vm461_vm4, %v1784_v43  ;;  %v887_v31 = vsel %vm461_vm4, %v1784_v43, 0.0 }
 0x604   : > { %1566 = vmatmul.mubr.msk.f32.vlgmr.msra.gmra.mrb[10].mxu1 %vm461_vm4, %v1786_v44  ;;  %v890_v54 = vsel %vm461_vm4, %v1786_v44, 0.0 }
 0x605   : > { %1664 = vmatpush3.bf16.xpose.msk.msra.mxu1 %vm2056_vm3, %v1659_v28  ;;  %1572 = vmatprep.mubr.msk.f32.mxu1 %vm375_vm2, %v996_v45  ;;  %v239_v28 = vld [vmem:[%s2233_s3 + $0x8] sm:$0xff] }
 0x60c   : > { %1573 = vmatmul.mubr.msk.f32.vlgmr.msra.gmra.mrb[12].mxu1 %vm375_vm2, %v998_v27 }
 0x6d7   : > { %v2124_v33 = vpop.f32.mrb[10].mxu1 }
 0x6d8   : > { %v973_v46 = vpop.f32.mrb[11].mxu1 }
 0x6df   : > { %v1574_v47 = vpop.f32.mrb[12].mxu1 }
 0x6e0   : > { %v1077_v48 = vpop.f32.mrb[13].mxu1  ;;  %v1089_v49 = vsel %vm461_vm4, %v1574_v47, -inf }
 0x6e1   : > { %1090 = vmax.xlane.f32.xlu0 %v1089_v49  ;;  %v1086_v50 = vsel %vm461_vm4, %v1077_v48, -inf  ;;  %v1433_v49 = vld [vmem:[%s2234_s4] ss:$0 sm:$0xff] }
 0x6e2   : > { %1087 = vmax.xlane.f32.xlu1 %v1086_v50 }
 0x6e6   : > { %680 = vadd.xlane.f32.xlu1 %v679_v51 }
 0x6ea   : > { %888 = vadd.xlane.f32.xlu1 %v887_v31 }
 0x6ee   : > { %891 = vadd.xlane.f32.xlu1 %v890_v54 }
 0x6f7   : > { %1771 = vrot.lane.b32.xlu0 %v2047_v26, %s1881_s14  ;;  %s217_s14 = scalar_lea.vmem [#allocation3], %s1391_s11 }
 0x716   : > { %677 = vadd.xlane.f32.xlu0 %v676_v55 }
 0x71a   : > { %478 = vadd.xlane.f32.xlu0 %v477_v58 }
 0x76e   : > { %v1091_v59 = vpop.xlane.xlu0 %1090 }
 0x76f   : > { %v1093_v60 = vsub.f32 %v1574_v47, %v1091_v59  ;;  %v1088_v61 = vpop.xlane.xlu1 %1087 }
 0x770   : > { %v1092_v62 = vsub.f32 %v1077_v48, %v1088_v61 }
 0x771   : > { %v1096_v63 = vmul.f32 1.442695, %v1093_v60 }
 0x772   : > { %v1094_v0 = vmul.f32 1.442695, %v1092_v62  ;;  %v1772_v1 = vpop.permute.xlu0 %1771 }
 0x773   : > { %1787 = vpow2.f32 %v1096_v63  ;;  %v1774_v2 = vunpack.i.h.bf16 %v1772_v1  ;;  %v1773_v3 = vunpack.i.l.bf16 %v1772_v1  ;;  %v681_v5 = vpop.xlane.xlu1 %680 }
 0x774   : > { %1789 = vpow2.f32 %v1094_v0 }
 0x775   : > { %v1665_v26 = vpack.c.bf16 %v1774_v2, %v1773_v3  ;;  %1791 = vrcp.f32 %v681_v5 }
 0x777   : > { %1666 = vmatprep.subr.bf16.mxu1 %v1665_v26  ;;  %v889_v13 = vpop.xlane.xlu1 %888 }
 0x778   : > { %1668 = vmatpush3.bf16.msra.mxu1 %v1665_v26 }
 0x77b   : > { %v892_v15 = vpop.xlane.xlu1 %891 }
 0x77d   : > { %v1788_v6 = vpop.eup %1787 }
 0x77e   : > { %v1790_v7 = vpop.eup %1789  ;;  %v1101_v11 = vsel %vm461_vm4, %v1788_v6, 0.0 }
 0x77f   : > { %v1792_v53 = vpop.eup %1791  ;;  %1579 = vmatprep.mubr.msk.f32.mxu1 %vm461_vm4, %v1790_v7  ;;  %v1098_v8 = vsel %vm461_vm4, %v1790_v7, 0.0 }
 0x780   : > { %1580 = vmatmul.mubr.msk.f32.vlgmr.msra.gmra.mrb[14].mxu1 %vm461_vm4, %v1788_v6  ;;  %1099 = vadd.xlane.f32.xlu1 %v1098_v8  ;;  %v772_v10 = vmul.f32 %v1792_v53, %v2110_v29  ;;  %v1669_v29 = vpack.c.bf16 %v239_v28, %v238_v25 }
 0x782   : > { %777 = vrot.lane.b32.xlu0 %v772_v10, %s1882_s15  ;;  %1671 = vmatprep.subr.msk.bf16.mxu0 %vm1977_vm1, %v1669_v29 }
 0x783   : > { %1674 = vmatpush3.bf16.xpose.msk.msra.mxu0 %vm1977_vm1, %v1669_v29 }
 0x784   : > { %1102 = vadd.xlane.f32.xlu1 %v1101_v11 }
 0x788   : > { %475 = vadd.xlane.f32.xlu1 %v474_v12 }
 0x7a3   : > { %v678_v14 = vpop.xlane.xlu0 %677 }
 0x7a4   : > { %1793 = vrcp.f32 %v678_v14 }
 0x7a5   : > { %1795 = vrcp.f32 %v889_v13 }
 0x7a7   : > { %v479_v16 = vpop.xlane.xlu0 %478 }
 0x7a8   : > { %1797 = vrcp.f32 %v479_v16 }
 0x7a9   : > { %1799 = vrcp.f32 %v892_v15 }
 0x7ae   : > { %v1794_v17 = vpop.eup %1793 }
 0x7af   : > { %v771_v18 = vmul.f32 %v1794_v17, %v2112_v30  ;;  %v1796_v19 = vpop.eup %1795 }
 0x7b0   : > { %v982_v22 = vmul.f32 %v1796_v19, %v973_v46 }
 0x7b1   : > { %775 = vrot.lane.b32.xlu1 %v771_v18, %s1882_s15 }
 0x7b2   : > { %v1798_v21 = vpop.eup %1797 }
 0x7b3   : > { %v570_v23 = vmul.f32 %v1798_v21, %v2088_v56  ;;  %v1800_v52 = vpop.eup %1799 }
 0x7b4   : > { %v983_v24 = vmul.f32 %v1800_v52, %v2124_v33 }
 0x7b5   : > { %986 = vrot.lane.b32.xlu1 %v982_v22, %s1883_s16  ;;  %572 = vst.msk [vmem:[#allocation2 + $0x8] sm:$0xff] %vm375_vm2, %v570_v23 }
 0x7b9   : > { %988 = vrot.lane.b32.xlu1 %v983_v24, %s1883_s16  ;;  %s1325_s16 = sshll.u32 %s217_s14, 4  ;;  %s2178_s16 = int_to_ptr.vmem [resolvable:$true] %s1325_s16 }
 0x7ba   : > { %s1807_s17 = scalar_lea.vmem %s2178_s16, 256  ;;  %p1814_p0 = scmp.lt.s32.totalorder %s2178_s16, %s1812_s7 }
 0x7bb   : > { %p1808_p11 = scmp.ne.s32.totalorder %s2178_s16, %s1807_s17  ;;  %p1815_p1 = scmp.lt.s32.totalorder %s1813_s8, %s1807_s17 }
 0x7bd   : > { %p1809_p12 = pnand %p1808_p11, %p1955_p5  ;;  %p1816_p2 = por %p1815_p1, %p1814_p0 }
 0x7bf   : > { %p1810_p13 = pneg %p1809_p12 }
 0x7c1   : > { %p1817_p3 = pnand %p1816_p2, %p1810_p13 }
 0x7f4   : > { %v778_v56 = vpop.permute.xlu0 %777 }
 0x7f5   : > { %783 = vst.msk [vmem:[#allocation2 + $0x8] sm:$0xff] %vm781_vm5, %v778_v56 }
 0x80d   : > { %v1100_v30 = vpop.xlane.xlu1 %1099 }
 0x811   : > { %v1103_v32 = vpop.xlane.xlu1 %1102 }
 0x815   : > { %v476_v34 = vpop.xlane.xlu1 %475 }
 0x816   : > { %1801 = vrcp.f32 %v476_v34 }
 0x817   : > { %1803 = vrcp.f32 %v1103_v32 }
 0x818   : > { %1805 = vrcp.f32 %v1100_v30 }
 0x820   : > { %v1802_v35 = vpop.eup %1801 }
 0x821   : > { %v569_v36 = vmul.f32 %v1802_v35, %v2090_v57  ;;  %v1675_v57 = vpack.c.bf16 %v241_v41, %v240_v40  ;;  %v1804_v42 = vpop.eup %1803 }
 0x822   : > { %v1806_v44 = vpop.eup %1805 }
 0x823   : > { %571 = vst.msk [vmem:[#allocation2] sm:$0xff] %vm375_vm2, %v569_v36  ;;  %v776_v37 = vpop.permute.xlu1 %775  ;;  %1677 = vmatprep.subr.msk.bf16.mxu0 %vm1977_vm1, %v1675_v57 }
 0x824   : > { %782 = vst.msk [vmem:[#allocation2] sm:$0xff] %vm781_vm5, %v776_v37  ;;  %1680 = vmatpush3.bf16.xpose.msk.msra.mxu0 %vm1977_vm1, %v1675_v57 }
 0x827   : > { %v987_v38 = vpop.permute.xlu1 %986 }
 0x828   : > { %993 = vst.msk [vmem:[#allocation2] sm:$0xff] %vm992_vm6, %v987_v38 }
 0x82b   : > { %v989_v39 = vpop.permute.xlu1 %988 }
 0x82c   : > { %994 = vst.msk [vmem:[#allocation2 + $0x8] sm:$0xff] %vm992_vm6, %v989_v39 }
 0x853   : > { %v1581_v43 = vpop.f32.mrb[14].mxu1 }
 0x854   : > { %v1194_v45 = vmul.f32 %v1804_v42, %v1581_v43  ;;  %v1184_v27 = vpop.f32.mrb[15].mxu1 }
 0x855   : > { %v1193_v33 = vmul.f32 %v1806_v44, %v1184_v27 }
 0x856   : > { %1199 = vrot.lane.b32.xlu1 %v1194_v45, %s1884_s9 }
 0x857   : > { %1197 = vrot.lane.b32.xlu0 %v1193_v33, %s1884_s9 }
 0x8c8   : > { %v1200_v46 = vpop.permute.xlu1 %1199 }
 0x8c9   : > { %1205 = vst.msk [vmem:[#allocation2 + $0x8] sm:$0xff] %vm1203_vm7, %v1200_v46  ;;  %v1198_v47 = vpop.permute.xlu0 %1197 }
 0x8ca   : > { %1204 = vst.msk [vmem:[#allocation2] sm:$0xff] %vm1203_vm7, %v1198_v47 }
 0x8d0   : > { %v1207_v4 = vld [vmem:[#allocation2 + $0x8] sm:$0xff] }
 0x8d1   : > { %v1206_v48 = vld [vmem:[#allocation2] sm:$0xff] }
 0x8d2   : > { %1590 = vmatprep.mubr.msk.f32.mxu0 %vm249_vm0, %v1206_v48 }
 0x8d3   : > { %1591 = vmatmul.mubr.msk.f32.vlgmr.msra.gmra.mrb[2].mxu0 %vm249_vm0, %v1207_v4 }
 0x9a6   : > { %v1592_v50 = vpop.f32.mrb[2].mxu0 }
 0x9a7   : > { %v1304_v51 = vadd.f32 %v1592_v50, %v1433_v49  ;;  %v1298_v31 = vpop.f32.mrb[3].mxu0 }
 0x9a8   : > { %v1299_v54 = vadd.f32 %v1433_v49, %v1298_v31 }
 0x9a9   : > { %v1308_v55 = vadd.f32 %v1304_v51, %v2040_v20 }
 0x9aa   : > { %v1307_v58 = vadd.f32 %v1299_v54, %v2000_v9 }
 0x9ab   : > { %1310 = vst.msk [vmem:[%s217_s14 + $0x8] sm:$0xff] %vm249_vm0, %v1308_v55 }
 0x9ac   : > { %1309 = vst.msk [vmem:[%s217_s14] sm:$0xff] %vm249_vm0, %v1307_v58 }
 0x9ad   : > { %1820 = shalt.err (!%p1817_p3)
}
 0x9ae   : > { %s1821_s9 = scalar_lea.hbm %s2184_s30, 256  ;;  %s1825_s12 = scalar_lea.hbm %s2235_s5, 512 }
 0x9af   : > { %p1822_p4 = scmp.ne.s32.totalorder %s2184_s30, %s1821_s9  ;;  %p1826_p9 = scmp.lt.u32.totalorder %s2184_s30, %s2235_s5 }
 0x9b0   : > { %p1827_p10 = scmp.lt.u32.totalorder %s1825_s12, %s1821_s9  ;;  %p1829_p12 = scmp.lt.u32.totalorder %s1821_s9, %s2184_s30 }
 0x9b1   : > { %p1823_p7 = pnand %p1822_p4, %p1955_p5 }
 0x9b2   : > { %p1828_p11 = por %p1827_p10, %p1826_p9 }
 0x9b3   : > { %p1824_p8 = pneg %p1823_p7 }
 0x9b4   : > { %p1830_p13 = por %p1829_p12, %p1828_p11 }
 0x9b6   : > { %p1831_p0 = pnand %p1830_p13, %p1824_p8 }
 0x9b8   : > { %1834 = shalt.err (!%p1831_p0)
}
 0x9b9   : > { %s1886_s23 = smov 128  }
 0x9ba   : > { %1681 = dma.vmem_to_hbm [thread:$0]  (%p1955_p5), %s2178_s16, 256, %s2184_s30, %s2188_s22, %s1886_s23, %s1886_s23, %s1882_s15  }
 0x9bb PF: > { %p1687_p1 = scmp.ge.s32.totalorder %s1869_s21, 2  ;;  %s1340_s25 = sand.u32 1, %s1857_s18  }
 0x9bc   : > { %s1341_s26 = scalar_lea.sflag [#allocation4], %s1340_s25 }
 0x9bd   : > { %p1684_p2 = pnand %p1687_p1, %p1959_p6 }
 0x9bf   : > { %1852 = dma.done.wait (!%p1684_p2), %s1341_s26, 256  }
 0x9c0   : > { %1854 = vsyncadd (!%p1684_p2), %s1341_s26, 4294967040  ;;  %p15_p3 = scmp.ge.s32.totalorder %s1942_s24, 4   ;;  %s2242_s18 = smov %s1861_s19 }
 0x9c1   : > { %s2243_s19 = smov %s1865_s20  ;;  %s2244_s20 = smov %s1953_s27 }
 0x9c2   : > { %s2245_s21 = smov %s1942_s24  ;;  %17 = sbr.rel (!%p15_p3) target bundleno = 3 (0x3), region = 75 }
 0x9c9   :  { %1346 = vsyncpa [#allocation4], 1 }
 0x9ca   :  { %1348 = vsyncpa [#allocation4 + $0x1], 1 }

</bundles_post_ra>
